<compile_context>
chip_gen: v6e
topology: v6e:2x2x1
jax: 0.10.0
libtpu: 0.0.40
codegen_flags: <defaults>
</compile_context>

<pallas_src>
import jax
import jax.numpy as jnp
from jax import lax
from jax.experimental import pallas as pl
from jax.experimental.pallas import tpu as pltpu

n_embd = 384
block_size = 256   # causal-mask capacity in the reference (we only need T <= block_size)
dropout = 0.1      # TODO(synk): dropout layer treated as identity (eval mode), no in-kernel RNG.


def _head_kernel(x_ref, wqkv_ref, o_ref):
    # One grid step per batch element; refs are already squeezed to 2-D tiles.
    T = x_ref.shape[0]
    H = o_ref.shape[1]
    scale = float(H) ** 0.5   # NOTE: reference MULTIPLIES by sqrt(head_size).

    x = x_ref[...].astype(jnp.bfloat16)          # (T, C)
    wqkv = wqkv_ref[...].astype(jnp.bfloat16)    # (C, 3H)  [Wq | Wk | Wv]

    # Fused QKV projection: one (T,C)x(C,3H) MXU pass, f32 accumulation.
    qkv = jnp.dot(x, wqkv, preferred_element_type=jnp.float32)   # (T, 3H)
    q = (qkv[:, 0:H] * scale).astype(jnp.bfloat16)   # fold score scale into (T,H) tile
    k = qkv[:, H:2 * H].astype(jnp.bfloat16)
    v = qkv[:, 2 * H:3 * H].astype(jnp.bfloat16)

    # scores = q @ k.T  -> (T_query, T_key), f32 accumulate.
    wei = lax.dot_general(q, k, (((1,), (1,)), ((), ())),
                          preferred_element_type=jnp.float32)

    # causal mask: tril == 0  <=>  key index > query index  -> -inf
    row = lax.broadcasted_iota(jnp.int32, (T, T), 0)
    col = lax.broadcasted_iota(jnp.int32, (T, T), 1)
    wei = jnp.where(col > row, -jnp.inf, wei)

    # F.softmax(wei, dim=1): normalize over the QUERY axis (axis 0 here), in f32.
    m = jnp.max(wei, axis=0, keepdims=True)          # (1, T)
    e = jnp.exp(wei - m)                             # (T, T)
    s = jnp.sum(e, axis=0, keepdims=True)            # (1, T)
    p = e * (1.0 / s)                                # exact recip of a tiny (1,T) row
    # TODO(synk): attention dropout omitted (eval-mode identity).

    o_ref[...] = jnp.dot(p.astype(jnp.bfloat16), v,
                         preferred_element_type=jnp.float32).astype(o_ref.dtype)


def head_attention(x, wq, wk, wv):
    """x: (B, T, C); wq/wk/wv: (C, H) (nn.Linear weights pre-transposed)."""
    B, T, C = x.shape
    H = wq.shape[1]
    wqkv = jnp.concatenate([wq, wk, wv], axis=1)   # (C, 3H)
    return pl.pallas_call(
        _head_kernel,
        out_shape=jax.ShapeDtypeStruct((B, T, H), jnp.float32),
        grid=(B,),
        in_specs=[
            # leading size-1 batch dim squeezed out of the kernel view
            pl.BlockSpec((None, T, C), lambda b: (b, 0, 0)),   # x, per-batch tile
            pl.BlockSpec((C, 3 * H), lambda b: (0, 0)),        # fused QKV weights (VMEM-resident)
        ],
        out_specs=pl.BlockSpec((None, T, H), lambda b: (b, 0, 0)),
        compiler_params=pltpu.CompilerParams(
            dimension_semantics=("parallel",)),
    )(x, wqkv)


def _reference_matched(x, wqkv, H):
    """Mirror of the kernel math: bf16 matmul inputs, f32 accumulation, f32 softmax."""
    T = x.shape[1]
    f32 = jnp.float32
    xb = x.astype(jnp.bfloat16)
    wb = wqkv.astype(jnp.bfloat16)
    qkv = jnp.einsum('btc,ch->bth', xb, wb, preferred_element_type=f32)
    q = (qkv[..., 0:H] * (float(H) ** 0.5)).astype(jnp.bfloat16)
    k = qkv[..., H:2 * H].astype(jnp.bfloat16)
    v = qkv[..., 2 * H:3 * H].astype(jnp.bfloat16)
    wei = jnp.einsum('bqh,bkh->bqk', q, k, preferred_element_type=f32)
    row = lax.broadcasted_iota(jnp.int32, (T, T), 0)
    col = lax.broadcasted_iota(jnp.int32, (T, T), 1)
    wei = jnp.where((col > row)[None], -jnp.inf, wei)
    m = jnp.max(wei, axis=1, keepdims=True)
    e = jnp.exp(wei - m)
    s = jnp.sum(e, axis=1, keepdims=True)
    p = e * (1.0 / s)
    return jnp.einsum('bqk,bkh->bqh', p.astype(jnp.bfloat16), v,
                      preferred_element_type=f32)


def _reference_f32(x, wq, wk, wv):
    """Pure-f32 (HIGHEST precision) mirror of the PyTorch forward (eval mode)."""
    T = x.shape[1]
    H = wq.shape[1]
    hp = jax.lax.Precision.HIGHEST
    q = jnp.einsum('btc,ch->bth', x, wq, precision=hp)
    k = jnp.einsum('btc,ch->bth', x, wk, precision=hp)
    v = jnp.einsum('btc,ch->bth', x, wv, precision=hp)
    wei = jnp.einsum('bth,bsh->bts', q, k, precision=hp) * (float(H) ** 0.5)
    tril = jnp.tril(jnp.ones((T, T), jnp.float32))
    wei = jnp.where(tril[None] == 0, -jnp.inf, wei)
    wei = jax.nn.softmax(wei, axis=1)   # dim=1 of (B,T,T), as in the reference
    return jnp.einsum('bts,bsh->bth', wei, v, precision=hp)


if __name__ == "__main__":
    B, T = 2, 128
    head_size = 64          # typical head size for n_embd = 384
    C = n_embd
    assert T <= block_size

    key = jax.random.PRNGKey(0)
    kx, kq, kk, kv = jax.random.split(key, 4)
    x = jax.random.normal(kx, (B, T, C), jnp.float32)
    # nn.Linear(n_embd, head_size, bias=False) weights, stored pre-transposed (C, H).
    wq = 0.02 * jax.random.normal(kq, (C, head_size), jnp.float32)
    wk = 0.02 * jax.random.normal(kk, (C, head_size), jnp.float32)
    wv = 0.02 * jax.random.normal(kv, (C, head_size), jnp.float32)

    out = jax.block_until_ready(head_attention(x, wq, wk, wv))
    assert out.shape == (B, T, head_size), out.shape

    # 1) Logic check: reference with the SAME mixed precision as the kernel
    #    (bf16 matmul inputs, f32 accumulation, exact f32 softmax) — must match tightly.
    wqkv = jnp.concatenate([wq, wk, wv], axis=1)
    ref_m = _reference_matched(x, wqkv, head_size)
    err_m = float(jnp.max(jnp.abs(out - ref_m)))
    assert err_m < 2e-2, f"matched-precision mismatch: max abs err = {err_m}"

    # 2) Numerics check vs the true-f32 PyTorch-equivalent forward: normalized
    #    (Frobenius) error, robust to the few % per-element wiggle that bf16
    #    matmul inputs cause in near-tied softmax columns.
    ref_f = _reference_f32(x, wq, wk, wv)
    rel = float(jnp.linalg.norm(out - ref_f) / jnp.linalg.norm(ref_f))
    assert rel < 5e-2, f"f32 reference relative Frobenius error = {rel}"

    print("KERNEL_OK")
</pallas_src>

<mosaic_0001>
module attributes {stable_mosaic.version = 11 : i64} {
  func.func @_head_kernel(%arg0: i32, %arg1: memref<1x128x384xf32, #tpu.memory_space<vmem>>, %arg2: memref<384x192xf32, #tpu.memory_space<vmem>>, %arg3: memref<1x128x64xf32, #tpu.memory_space<vmem>>) attributes {dimension_semantics = [#tpu.dimension_semantics<parallel>], iteration_bounds = array<i64: 2>, scalar_prefetch = 0 : i64, scratch_operands = 0 : i64, tpu.core_type = #tpu.core_type<tc>, window_params = [{transform_indices = @transform_0, window_bounds = array<i64: 1, 128, 384>}, {pipeline_mode = #tpu.pipeline_mode<synchronous>, transform_indices = @transform_1, window_bounds = array<i64: 384, 192>}, {transform_indices = @transform_2, window_bounds = array<i64: 1, 128, 64>}]} {
    %c0 = arith.constant 0 : index
    %c0_0 = arith.constant 0 : index
    %c0_1 = arith.constant 0 : index
    %0 = vector.load %arg1[%c0, %c0_0, %c0_1] : memref<1x128x384xf32, #tpu.memory_space<vmem>>, vector<1x128x384xf32>
    %1 = vector.shape_cast %0 : vector<1x128x384xf32> to vector<128x384xf32>
    %2 = arith.truncf %1 : vector<128x384xf32> to vector<128x384xbf16>
    %c0_2 = arith.constant 0 : index
    %c0_3 = arith.constant 0 : index
    %3 = vector.load %arg2[%c0_2, %c0_3] : memref<384x192xf32, #tpu.memory_space<vmem>>, vector<384x192xf32>
    %4 = arith.truncf %3 : vector<384x192xf32> to vector<384x192xbf16>
    %cst = arith.constant dense<0.000000e+00> : vector<128x192xf32>
    %5 = tpu.matmul %2, %4, %cst {dimension_numbers = #tpu.dot_dimension_numbers<[1], [0], [0], [1], [0, 0, 1, 1], [], []>} : vector<128x384xbf16>, vector<384x192xbf16>, vector<128x192xf32> -> vector<128x192xf32>
    %6 = vector.extract_strided_slice %5 {offsets = [0, 0], sizes = [128, 64], strides = [1, 1]} : vector<128x192xf32> to vector<128x64xf32>
    %cst_4 = arith.constant 8.000000e+00 : f32
    %7 = vector.broadcast %cst_4 : f32 to vector<128x64xf32>
    %8 = arith.mulf %6, %7 : vector<128x64xf32>
    %9 = arith.truncf %8 : vector<128x64xf32> to vector<128x64xbf16>
    %10 = vector.extract_strided_slice %5 {offsets = [0, 64], sizes = [128, 64], strides = [1, 1]} : vector<128x192xf32> to vector<128x64xf32>
    %11 = arith.truncf %10 : vector<128x64xf32> to vector<128x64xbf16>
    %12 = vector.extract_strided_slice %5 {offsets = [0, 128], sizes = [128, 64], strides = [1, 1]} : vector<128x192xf32> to vector<128x64xf32>
    %13 = arith.truncf %12 : vector<128x64xf32> to vector<128x64xbf16>
    %cst_5 = arith.constant dense<0.000000e+00> : vector<128x128xf32>
    %14 = tpu.matmul %9, %11, %cst_5 {dimension_numbers = #tpu.dot_dimension_numbers<[1], [1], [0], [0], [0, 0, 1, 0], [], []>} : vector<128x64xbf16>, vector<128x64xbf16>, vector<128x128xf32> -> vector<128x128xf32>
    %15 = tpu.iota {dimensions = array<i32: 0>} : vector<128x128xi32>
    %16 = tpu.iota {dimensions = array<i32: 1>} : vector<128x128xi32>
    %17 = arith.cmpi sgt, %16, %15 : vector<128x128xi32>
    %cst_6 = arith.constant 0xFF800000 : f32
    %18 = vector.broadcast %cst_6 : f32 to vector<128x128xf32>
    %19 = arith.select %17, %18, %14 : vector<128x128xi1>, vector<128x128xf32>
    %cst_7 = arith.constant dense<0xFF800000> : vector<128xf32>
    %20 = vector.multi_reduction <maximumf>, %19, %cst_7 [0] : vector<128x128xf32> to vector<128xf32>
    %21 = vector.shape_cast %20 : vector<128xf32> to vector<1x128xf32>
    %22 = vector.broadcast %21 : vector<1x128xf32> to vector<128x128xf32>
    %23 = arith.subf %19, %22 : vector<128x128xf32>
    %24 = math.exp %23 : vector<128x128xf32>
    %cst_8 = arith.constant dense<0.000000e+00> : vector<128xf32>
    %25 = vector.multi_reduction <add>, %24, %cst_8 [0] : vector<128x128xf32> to vector<128xf32>
    %26 = vector.shape_cast %25 : vector<128xf32> to vector<1x128xf32>
    %cst_9 = arith.constant 1.000000e+00 : f32
    %27 = vector.broadcast %cst_9 : f32 to vector<1x128xf32>
    %28 = arith.divf %27, %26 : vector<1x128xf32>
    %29 = vector.broadcast %28 : vector<1x128xf32> to vector<128x128xf32>
    %30 = arith.mulf %24, %29 : vector<128x128xf32>
    %31 = arith.truncf %30 : vector<128x128xf32> to vector<128x128xbf16>
    %cst_10 = arith.constant dense<0.000000e+00> : vector<128x64xf32>
    %32 = tpu.matmul %31, %13, %cst_10 {dimension_numbers = #tpu.dot_dimension_numbers<[1], [0], [0], [1], [0, 0, 1, 1], [], []>} : vector<128x128xbf16>, vector<128x64xbf16>, vector<128x64xf32> -> vector<128x64xf32>
    %c0_11 = arith.constant 0 : index
    %c0_12 = arith.constant 0 : index
    %c0_13 = arith.constant 0 : index
    %33 = vector.load %arg3[%c0_11, %c0_12, %c0_13] : memref<1x128x64xf32, #tpu.memory_space<vmem>>, vector<1x128x64xf32>
    %34 = vector.shape_cast %33 : vector<1x128x64xf32> to vector<128x64xf32>
    %35 = vector.shape_cast %32 : vector<128x64xf32> to vector<1x128x64xf32>
    tpu.vector_store %arg3[%c0_11, %c0_12, %c0_13], %35 {strides = array<i32>} : memref<1x128x64xf32, #tpu.memory_space<vmem>>, vector<1x128x64xf32>,
    return
  }
  func.func @transform_0(%arg0: i32) -> (i32, i32, i32) {
    %c0_i32 = arith.constant 0 : i32
    %c0_i32_0 = arith.constant 0 : i32
    %c0_i32_1 = arith.constant 0 : i32
    return %arg0, %c0_i32, %c0_i32_0 : i32, i32, i32
  }
  func.func @transform_1(%arg0: i32) -> (i32, i32) {
    %c0_i32 = arith.constant 0 : i32
    %c0_i32_0 = arith.constant 0 : i32
    %c0_i32_1 = arith.constant 0 : i32
    return %c0_i32, %c0_i32_0 : i32, i32
  }
  func.func @transform_2(%arg0: i32) -> (i32, i32, i32) {
    %c0_i32 = arith.constant 0 : i32
    %c0_i32_0 = arith.constant 0 : i32
    %c0_i32_1 = arith.constant 0 : i32
    return %arg0, %c0_i32, %c0_i32_0 : i32, i32, i32
  }
}

</mosaic_0001>

<bundles_post_ra>
// kernel: tpu_custom_call.1
= control target key start
LH: loop header
LB: loop body
LE: loop exit
PB: predicated region body
PF: predicated region fallthrough
CT: control target
= control target key end

     0   :  { %s1341_s9 = smov 0   ;;  %s2005_s0 = inlined_call_operand.vmem [shape: f32[2,128,384], index: 0, kind: input, shape index: {}]   ;;  %s2006_s1 = inlined_call_operand.vmem [shape: f32[384,192], index: 1, kind: input, shape index: {}]   ;;  %s2007_s2 = inlined_call_operand.vmem [shape: f32[2,128,64], index: 2, kind: output, shape index: {}]  }
   0x1 LB: > { %s1132_s10 = sadd.s32 4294967295, %s1322_s9   ;;  %p1136_p0 = scmp.ge.s32.totalorder %s1322_s9, 1  ;;  %s1322_s9 = sphi %s1341_s9, %s12_s9  }
   0x2   : > { %p112_p1 = scmp.lt.s32.totalorder %s1322_s9, 3 }
   0x4   : > { %p113_p2 = pnand %p1136_p0, %p112_p1 }
   0x5   : > { %p1478_p3 = scmp.lt.s32.totalorder (!%p113_p2), %s1132_s10, 1 }
   0x6   : > { %116 = sbr.rel (%p113_p2) target bundleno = 1044 (0x414), region = 28 }
   0xb   : > { %v246_v0 = vld [vmem:[%s2006_s1 + $0xe8] sm:$0xff]  ;;  %v248_v1 = vld [vmem:[%s2006_s1 + $0xf8] sm:$0xff]  ;;  %v245_v2 = vld [vmem:[%s2006_s1 + $0xe0] sm:$0xff]  ;;  %v1324_v7 = vmov 0   ;;  %s2012_s10 = smov (!%p1478_p3, %s1132_s10), 1  ;;  %vm651_vm0 = vcmask 523264  }
   0xc   : > { %v328_v3 = vpack.c.bf16 %v248_v1, %v246_v0  ;;  %v247_v4 = vld [vmem:[%s2006_s1 + $0xf0] sm:$0xff]  ;;  %v242_v5 = vld [vmem:[%s2006_s1 + $0xc8] sm:$0xff]  ;;  %v244_v6 = vld [vmem:[%s2006_s1 + $0xd8] sm:$0xff]  ;;  %506 = vmatprep.mubr.bf16.mxu1 %v1324_v7  ;;  %s1271_s28 = smul.u32 384, %s2012_s10 }
   0xd   : > { %v327_v8 = vpack.c.bf16 %v247_v4, %v245_v2  ;;  %v326_v9 = vpack.c.bf16 %v244_v6, %v242_v5  ;;  %v241_v10 = vld [vmem:[%s2006_s1 + $0xc0] sm:$0xff]  ;;  %v243_v11 = vld [vmem:[%s2006_s1 + $0xd0] sm:$0xff]  ;;  %v238_v12 = vld [vmem:[%s2006_s1 + $0xa8] sm:$0xff] }
   0xe   : > { %361 = vmatprep.subr.bf16.mxu0 %v328_v3  ;;  %v240_v13 = vld [vmem:[%s2006_s1 + $0xb8] sm:$0xff]  ;;  %v325_v14 = vpack.c.bf16 %v243_v11, %v241_v10  ;;  %v237_v16 = vld [vmem:[%s2006_s1 + $0xa0] sm:$0xff]  ;;  %v239_v17 = vld [vmem:[%s2006_s1 + $0xb0] sm:$0xff]  ;;  %s1570_s21 = scalar_lea.vmem %s2005_s0, %s1271_s28  ;;  %s1150_s28 = sshll.u32 %s2012_s10, 7 }
   0xf   : > { %362 = vmatpush1.bf16.msra.mxu0 %v327_v8  ;;  %v324_v15 = vpack.c.bf16 %v240_v13, %v238_v12  ;;  %v234_v18 = vld [vmem:[%s2006_s1 + $0x88] sm:$0xff]  ;;  %v236_v19 = vld [vmem:[%s2006_s1 + $0x98] sm:$0xff]  ;;  %v323_v20 = vpack.c.bf16 %v239_v17, %v237_v16  ;;  %v233_v21 = vld [vmem:[%s2006_s1 + $0x80] sm:$0xff]  ;;  %s1968_s3 = scalar_lea.vmem %s2007_s2, %s1150_s28 }
  0x10   : > { %363 = vmatprep.subr.bf16.mxu0 %v326_v9  ;;  %v235_v22 = vld [vmem:[%s2006_s1 + $0x90] sm:$0xff]  ;;  %v322_v23 = vpack.c.bf16 %v236_v19, %v234_v18  ;;  %v230_v24 = vld [vmem:[%s2006_s1 + $0x68] sm:$0xff]  ;;  %v312_v26 = vld [vmem:[%s2006_s1 + $0x2f8] sm:$0xff] }
  0x11   : > { %v310_v25 = vld [vmem:[%s2006_s1 + $0x2e8] sm:$0xff]  ;;  %v232_v27 = vld [vmem:[%s2006_s1 + $0x78] sm:$0xff]  ;;  %v309_v29 = vld [vmem:[%s2006_s1 + $0x2e0] sm:$0xff]  ;;  %v321_v32 = vpack.c.bf16 %v235_v22, %v233_v21 }
  0x12   : > { %v360_v28 = vpack.c.bf16 %v312_v26, %v310_v25  ;;  %v311_v30 = vld [vmem:[%s2006_s1 + $0x2f0] sm:$0xff]  ;;  %v306_v33 = vld [vmem:[%s2006_s1 + $0x2c8] sm:$0xff]  ;;  %v308_v34 = vld [vmem:[%s2006_s1 + $0x2d8] sm:$0xff]  ;;  %v320_v36 = vpack.c.bf16 %v232_v27, %v230_v24 }
  0x13   : > { %364 = vmatpush1.bf16.msra.mxu0 %v325_v14  ;;  %v359_v31 = vpack.c.bf16 %v311_v30, %v309_v29  ;;  %v305_v35 = vld [vmem:[%s2006_s1 + $0x2c0] sm:$0xff]  ;;  %v231_v38 = vld [vmem:[%s2006_s1 + $0x70] sm:$0xff]  ;;  %v358_v39 = vpack.c.bf16 %v308_v34, %v306_v33  ;;  %v226_v41 = vld [vmem:[%s2006_s1 + $0x48] sm:$0xff] }
  0x14   : > { %365 = vmatprep.subr.bf16.mxu0 %v324_v15  ;;  %474 = vmatprep.subr.bf16.mxu1 %v360_v28  ;;  %v229_v37 = vld [vmem:[%s2006_s1 + $0x60] sm:$0xff]  ;;  %v307_v40 = vld [vmem:[%s2006_s1 + $0x2d0] sm:$0xff]  ;;  %v228_v42 = vld [vmem:[%s2006_s1 + $0x58] sm:$0xff] }
  0x15   : > { %475 = vmatpush1.bf16.msra.mxu1 %v359_v31  ;;  %v357_v43 = vpack.c.bf16 %v307_v40, %v305_v35  ;;  %v302_v44 = vld [vmem:[%s2006_s1 + $0x2a8] sm:$0xff]  ;;  %v304_v45 = vld [vmem:[%s2006_s1 + $0x2b8] sm:$0xff]  ;;  %v301_v46 = vld [vmem:[%s2006_s1 + $0x2a0] sm:$0xff]  ;;  %v319_v48 = vpack.c.bf16 %v231_v38, %v229_v37  ;;  %v318_v52 = vpack.c.bf16 %v228_v42, %v226_v41 }
  0x16   : > { %476 = vmatprep.subr.bf16.mxu1 %v358_v39  ;;  %v303_v47 = vld [vmem:[%s2006_s1 + $0x2b0] sm:$0xff]  ;;  %v225_v49 = vld [vmem:[%s2006_s1 + $0x40] sm:$0xff]  ;;  %v356_v51 = vpack.c.bf16 %v304_v45, %v302_v44  ;;  %v222_v53 = vld [vmem:[%s2006_s1 + $0x28] sm:$0xff] }
  0x17   : > { %366 = vmatpush1.bf16.msra.mxu0 %v323_v20  ;;  %v227_v50 = vld [vmem:[%s2006_s1 + $0x50] sm:$0xff]  ;;  %v355_v54 = vpack.c.bf16 %v303_v47, %v301_v46  ;;  %v298_v55 = vld [vmem:[%s2006_s1 + $0x288] sm:$0xff]  ;;  %v300_v56 = vld [vmem:[%s2006_s1 + $0x298] sm:$0xff] }
  0x18   : > { %367 = vmatprep.subr.bf16.mxu0 %v322_v23  ;;  %v224_v57 = vld [vmem:[%s2006_s1 + $0x38] sm:$0xff]  ;;  %v354_v58 = vpack.c.bf16 %v300_v56, %v298_v55  ;;  %v297_v59 = vld [vmem:[%s2006_s1 + $0x280] sm:$0xff]  ;;  %v299_v60 = vld [vmem:[%s2006_s1 + $0x290] sm:$0xff]  ;;  %v317_v61 = vpack.c.bf16 %v227_v50, %v225_v49 }
  0x19   : > { %477 = vmatpush1.bf16.msra.mxu1 %v357_v43  ;;  %v294_v62 = vld [vmem:[%s2006_s1 + $0x268] sm:$0xff]  ;;  %v296_v63 = vld [vmem:[%s2006_s1 + $0x278] sm:$0xff]  ;;  %v316_v0 = vpack.c.bf16 %v224_v57, %v222_v53  ;;  %v221_v1 = vld [vmem:[%s2006_s1 + $0x20] sm:$0xff]  ;;  %v353_v4 = vpack.c.bf16 %v299_v60, %v297_v59 }
  0x1a   : > { %478 = vmatprep.subr.bf16.mxu1 %v356_v51  ;;  %v223_v2 = vld [vmem:[%s2006_s1 + $0x30] sm:$0xff]  ;;  %v218_v3 = vld [vmem:[%s2006_s1 + $0x8] sm:$0xff]  ;;  %v220_v5 = vld [vmem:[%s2006_s1 + $0x18] sm:$0xff]  ;;  %v352_v6 = vpack.c.bf16 %v296_v63, %v294_v62 }
  0x1b   : > { %368 = vmatpush1.bf16.msra.mxu0 %v321_v32  ;;  %v293_v8 = vld [vmem:[%s2006_s1 + $0x260] sm:$0xff]  ;;  %v295_v9 = vld [vmem:[%s2006_s1 + $0x270] sm:$0xff]  ;;  %v290_v10 = vld [vmem:[%s2006_s1 + $0x248] sm:$0xff]  ;;  %v315_v12 = vpack.c.bf16 %v223_v2, %v221_v1  ;;  %v314_v13 = vpack.c.bf16 %v220_v5, %v218_v3 }
  0x1c   : > { %369 = vmatprep.subr.bf16.mxu0 %v320_v36  ;;  %v292_v11 = vld [vmem:[%s2006_s1 + $0x258] sm:$0xff]  ;;  %v217_v14 = vld [vmem:[%s2006_s1] sm:$0xff]  ;;  %v219_v15 = vld [vmem:[%s2006_s1 + $0x10] sm:$0xff]  ;;  %v351_v17 = vpack.c.bf16 %v295_v9, %v293_v8 }
  0x1d   : > { %479 = vmatpush1.bf16.msra.mxu1 %v355_v54  ;;  %v278_v16 = vld [vmem:[%s2006_s1 + $0x1e8] sm:$0xff]  ;;  %v280_v18 = vld [vmem:[%s2006_s1 + $0x1f8] sm:$0xff]  ;;  %v350_v19 = vpack.c.bf16 %v292_v11, %v290_v10  ;;  %v289_v20 = vld [vmem:[%s2006_s1 + $0x240] sm:$0xff]  ;;  %v313_v24 = vpack.c.bf16 %v219_v15, %v217_v14 }
  0x1e   : > { %480 = vmatprep.subr.bf16.mxu1 %v354_v58  ;;  %v291_v21 = vld [vmem:[%s2006_s1 + $0x250] sm:$0xff]  ;;  %v286_v22 = vld [vmem:[%s2006_s1 + $0x228] sm:$0xff]  ;;  %v288_v23 = vld [vmem:[%s2006_s1 + $0x238] sm:$0xff]  ;;  %v344_v25 = vpack.c.bf16 %v280_v18, %v278_v16 }
  0x1f   : > { %370 = vmatpush1.bf16.msra.mxu0 %v319_v48  ;;  %v277_v26 = vld [vmem:[%s2006_s1 + $0x1e0] sm:$0xff]  ;;  %v279_v27 = vld [vmem:[%s2006_s1 + $0x1f0] sm:$0xff]  ;;  %v274_v28 = vld [vmem:[%s2006_s1 + $0x1c8] sm:$0xff]  ;;  %v349_v29 = vpack.c.bf16 %v291_v21, %v289_v20  ;;  %v348_v31 = vpack.c.bf16 %v288_v23, %v286_v22 }
  0x20   : > { %371 = vmatprep.subr.bf16.mxu0 %v318_v52  ;;  %v276_v30 = vld [vmem:[%s2006_s1 + $0x1d8] sm:$0xff]  ;;  %v285_v32 = vld [vmem:[%s2006_s1 + $0x220] sm:$0xff]  ;;  %v287_v33 = vld [vmem:[%s2006_s1 + $0x230] sm:$0xff]  ;;  %v343_v36 = vpack.c.bf16 %v279_v27, %v277_v26 }
  0x21   : > { %481 = vmatpush1.bf16.msra.mxu1 %v353_v4  ;;  %v282_v34 = vld [vmem:[%s2006_s1 + $0x208] sm:$0xff]  ;;  %v284_v35 = vld [vmem:[%s2006_s1 + $0x218] sm:$0xff]  ;;  %v273_v37 = vld [vmem:[%s2006_s1 + $0x1c0] sm:$0xff]  ;;  %v342_v39 = vpack.c.bf16 %v276_v30, %v274_v28  ;;  %v347_v42 = vpack.c.bf16 %v287_v33, %v285_v32 }
  0x22   : > { %482 = vmatprep.subr.bf16.mxu1 %v352_v6  ;;  %v146_v38 = vld [vmem:[%s1570_s21 + $0x8] sm:$0xff]  ;;  %v275_v40 = vld [vmem:[%s2006_s1 + $0x1d0] sm:$0xff]  ;;  %v149_v43 = vld [vmem:[%s1570_s21 + $0x20] sm:$0xff]  ;;  %v346_v45 = vpack.c.bf16 %v284_v35, %v282_v34 }
  0x23   : > { %372 = vmatpush1.bf16.msra.mxu0 %v317_v61  ;;  %v270_v41 = vld [vmem:[%s2006_s1 + $0x1a8] sm:$0xff]  ;;  %v272_v44 = vld [vmem:[%s2006_s1 + $0x1b8] sm:$0xff]  ;;  %v281_v46 = vld [vmem:[%s2006_s1 + $0x200] sm:$0xff]  ;;  %v194_v48 = vpack.c.bf16 %v149_v43, %v146_v38  ;;  %v341_v49 = vpack.c.bf16 %v275_v40, %v273_v37 }
  0x24   : > { %373 = vmatprep.subr.bf16.mxu0 %v316_v0  ;;  %v283_v47 = vld [vmem:[%s2006_s1 + $0x210] sm:$0xff]  ;;  %v269_v50 = vld [vmem:[%s2006_s1 + $0x1a0] sm:$0xff]  ;;  %v340_v51 = vpack.c.bf16 %v272_v44, %v270_v41  ;;  %v150_v55 = vld [vmem:[%s1570_s21 + $0x28] sm:$0xff] }
  0x25   : > { %483 = vmatpush1.bf16.msra.mxu1 %v351_v17  ;;  %393 = vmatprep.mubr.bf16.mxu0 %v194_v48  ;;  %v271_v52 = vld [vmem:[%s2006_s1 + $0x1b0] sm:$0xff]  ;;  %v345_v53 = vpack.c.bf16 %v283_v47, %v281_v46  ;;  %v266_v56 = vld [vmem:[%s2006_s1 + $0x188] sm:$0xff]  ;;  %v268_v57 = vld [vmem:[%s2006_s1 + $0x198] sm:$0xff] }
  0x26   : > { %484 = vmatprep.subr.bf16.mxu1 %v350_v19  ;;  %v147_v54 = vld [vmem:[%s1570_s21 + $0x10] sm:$0xff]  ;;  %v339_v58 = vpack.c.bf16 %v271_v52, %v269_v50  ;;  %v338_v60 = vpack.c.bf16 %v268_v57, %v266_v56  ;;  %v265_v61 = vld [vmem:[%s2006_s1 + $0x180] sm:$0xff]  ;;  %v262_v63 = vld [vmem:[%s2006_s1 + $0x168] sm:$0xff] }
  0x27   : > { %374 = vmatpush1.bf16.msra.mxu0 %v315_v12  ;;  %v195_v59 = vpack.c.bf16 %v150_v55, %v147_v54  ;;  %v267_v62 = vld [vmem:[%s2006_s1 + $0x190] sm:$0xff]  ;;  %v264_v0 = vld [vmem:[%s2006_s1 + $0x178] sm:$0xff]  ;;  %v261_v2 = vld [vmem:[%s2006_s1 + $0x160] sm:$0xff] }
  0x28   : > { %375 = vmatprep.subr.bf16.mxu0 %v314_v13  ;;  %v337_v1 = vpack.c.bf16 %v267_v62, %v265_v61  ;;  %v336_v3 = vpack.c.bf16 %v264_v0, %v262_v63  ;;  %v263_v4 = vld [vmem:[%s2006_s1 + $0x170] sm:$0xff]  ;;  %v153_v5 = vld [vmem:[%s1570_s21 + $0x40] sm:$0xff]  ;;  %v156_v6 = vld [vmem:[%s1570_s21 + $0x58] sm:$0xff] }
  0x29   : > { %485 = vmatpush1.bf16.msra.mxu1 %v349_v29  ;;  %v258_v8 = vld [vmem:[%s2006_s1 + $0x148] sm:$0xff]  ;;  %v260_v9 = vld [vmem:[%s2006_s1 + $0x158] sm:$0xff]  ;;  %v335_v10 = vpack.c.bf16 %v263_v4, %v261_v2  ;;  %v198_v11 = vpack.c.bf16 %v156_v6, %v153_v5  ;;  %v257_v13 = vld [vmem:[%s2006_s1 + $0x140] sm:$0xff] }
  0x2a   : > { %486 = vmatprep.subr.bf16.mxu1 %v348_v31  ;;  %v334_v12 = vpack.c.bf16 %v260_v9, %v258_v8  ;;  %v259_v14 = vld [vmem:[%s2006_s1 + $0x150] sm:$0xff]  ;;  %v254_v15 = vld [vmem:[%s2006_s1 + $0x128] sm:$0xff]  ;;  %v256_v16 = vld [vmem:[%s2006_s1 + $0x138] sm:$0xff] }
  0x2b   : > { %376 = vmatpush1.bf16.msra.mxu0 %v313_v24  ;;  %v333_v17 = vpack.c.bf16 %v259_v14, %v257_v13  ;;  %v253_v18 = vld [vmem:[%s2006_s1 + $0x120] sm:$0xff]  ;;  %v332_v19 = vpack.c.bf16 %v256_v16, %v254_v15  ;;  %v255_v20 = vld [vmem:[%s2006_s1 + $0x130] sm:$0xff]  ;;  %v162_v22 = vld [vmem:[%s1570_s21 + $0x88] sm:$0xff] }
  0x2c   : > { %377 = vmatprep.subr.bf16.mxu0 %v344_v25  ;;  %v159_v21 = vld [vmem:[%s1570_s21 + $0x70] sm:$0xff]  ;;  %v250_v23 = vld [vmem:[%s2006_s1 + $0x108] sm:$0xff]  ;;  %v252_v24 = vld [vmem:[%s2006_s1 + $0x118] sm:$0xff]  ;;  %v331_v25 = vpack.c.bf16 %v255_v20, %v253_v18 }
  0x2d   : > { %487 = vmatpush1.bf16.msra.mxu1 %v347_v42  ;;  %v201_v26 = vpack.c.bf16 %v162_v22, %v159_v21  ;;  %v330_v27 = vpack.c.bf16 %v252_v24, %v250_v23  ;;  %v249_v28 = vld [vmem:[%s2006_s1 + $0x100] sm:$0xff]  ;;  %v251_v29 = vld [vmem:[%s2006_s1 + $0x110] sm:$0xff]  ;;  %v148_v32 = vld [vmem:[%s1570_s21 + $0x18] sm:$0xff] }
  0x2e   : > { %488 = vmatprep.subr.bf16.mxu1 %v346_v45  ;;  %v329_v30 = vpack.c.bf16 %v251_v29, %v249_v28  ;;  %v145_v31 = vld [vmem:[%s1570_s21] sm:$0xff]  ;;  %v152_v33 = vld [vmem:[%s1570_s21 + $0x38] sm:$0xff]  ;;  %v155_v34 = vld [vmem:[%s1570_s21 + $0x50] sm:$0xff] }
  0x2f   : > { %378 = vmatpush2.bf16.msra.mxu0 %v343_v36  ;;  %v165_v35 = vld [vmem:[%s1570_s21 + $0xa0] sm:$0xff]  ;;  %v168_v36 = vld [vmem:[%s1570_s21 + $0xb8] sm:$0xff]  ;;  %v193_v37 = vpack.c.bf16 %v148_v32, %v145_v31  ;;  %v197_v38 = vpack.c.bf16 %v155_v34, %v152_v33  ;;  %v151_v40 = vld [vmem:[%s1570_s21 + $0x30] sm:$0xff] }
  0x30   : > { %379 = vmatprep.subr.bf16.mxu0 %v342_v39  ;;  %v204_v39 = vpack.c.bf16 %v168_v36, %v165_v35  ;;  %v154_v41 = vld [vmem:[%s1570_s21 + $0x48] sm:$0xff]  ;;  %v161_v43 = vld [vmem:[%s1570_s21 + $0x80] sm:$0xff]  ;;  %v171_v44 = vld [vmem:[%s1570_s21 + $0xd0] sm:$0xff] }
  0x31   : > { %489 = vmatpush1.bf16.msra.mxu1 %v345_v53  ;;  %v158_v42 = vld [vmem:[%s1570_s21 + $0x68] sm:$0xff]  ;;  %v196_v46 = vpack.c.bf16 %v154_v41, %v151_v40  ;;  %v160_v50 = vld [vmem:[%s1570_s21 + $0x78] sm:$0xff]  ;;  %v167_v52 = vld [vmem:[%s1570_s21 + $0xb0] sm:$0xff] }
  0x32   : > { %v174_v45 = vld [vmem:[%s1570_s21 + $0xe8] sm:$0xff]  ;;  %v200_v47 = vpack.c.bf16 %v161_v43, %v158_v42  ;;  %v177_v53 = vld [vmem:[%s1570_s21 + $0x100] sm:$0xff]  ;;  %v180_v54 = vld [vmem:[%s1570_s21 + $0x118] sm:$0xff] }
  0x33   : > { %380 = vmatpush2.bf16.msra.mxu0 %v341_v49  ;;  %v207_v48 = vpack.c.bf16 %v174_v45, %v171_v44  ;;  %v157_v49 = vld [vmem:[%s1570_s21 + $0x60] sm:$0xff]  ;;  %v210_v57 = vpack.c.bf16 %v180_v54, %v177_v53  ;;  %v183_v62 = vld [vmem:[%s1570_s21 + $0x130] sm:$0xff]  ;;  %v186_v63 = vld [vmem:[%s1570_s21 + $0x148] sm:$0xff] }
  0x34   : > { %381 = vmatprep.subr.bf16.mxu0 %v340_v51  ;;  %507 = vmatmul.mubr.bf16.vlgmr.msra.gmra.mxu1 %v195_v59  ;;  %v164_v51 = vld [vmem:[%s1570_s21 + $0x98] sm:$0xff]  ;;  %v199_v55 = vpack.c.bf16 %v160_v50, %v157_v49  ;;  %v166_v59 = vld [vmem:[%s1570_s21 + $0xa8] sm:$0xff]  ;;  %v173_v61 = vld [vmem:[%s1570_s21 + $0xe0] sm:$0xff]  ;;  %v213_v2 = vpack.c.bf16 %v186_v63, %v183_v62 }
  0x35   : > { %516 = vmatprep.mubr.bf16.mxu1 %v1324_v7  ;;  %v203_v56 = vpack.c.bf16 %v167_v52, %v164_v51  ;;  %v172_v4 = vld [vmem:[%s1570_s21 + $0xd8] sm:$0xff]  ;;  %v179_v6 = vld [vmem:[%s1570_s21 + $0x110] sm:$0xff]  ;;  %v189_v8 = vld [vmem:[%s1570_s21 + $0x160] sm:$0xff] }
  0x36   : > { %v176_v5 = vld [vmem:[%s1570_s21 + $0xf8] sm:$0xff]  ;;  %v175_v13 = vld [vmem:[%s1570_s21 + $0xf0] sm:$0xff]  ;;  %v178_v14 = vld [vmem:[%s1570_s21 + $0x108] sm:$0xff] }
  0x37   : > { %382 = vmatpush2.bf16.msra.mxu0 %v339_v58  ;;  %v163_v58 = vld [vmem:[%s1570_s21 + $0x90] sm:$0xff]  ;;  %v192_v9 = vld [vmem:[%s1570_s21 + $0x178] sm:$0xff]  ;;  %v182_v15 = vld [vmem:[%s1570_s21 + $0x128] sm:$0xff] }
  0x38   : > { %383 = vmatprep.subr.bf16.mxu0 %v338_v60  ;;  %v170_v60 = vld [vmem:[%s1570_s21 + $0xc8] sm:$0xff]  ;;  %v202_v0 = vpack.c.bf16 %v166_v59, %v163_v58  ;;  %v185_v16 = vld [vmem:[%s1570_s21 + $0x140] sm:$0xff]  ;;  %v188_v20 = vld [vmem:[%s1570_s21 + $0x158] sm:$0xff] }
  0x39   : > { %v181_v18 = vld [vmem:[%s1570_s21 + $0x120] sm:$0xff]  ;;  %v191_v21 = vld [vmem:[%s1570_s21 + $0x170] sm:$0xff] }
  0x3a   : > { %v215_v23 = vpack.c.bf16 %v191_v21, %v188_v20  ;;  %v187_v24 = vld [vmem:[%s1570_s21 + $0x150] sm:$0xff] }
  0x3b   : > { %384 = vmatpush2.bf16.msra.mxu0 %v337_v1  ;;  %v206_v1 = vpack.c.bf16 %v173_v61, %v170_v60 }
  0x3c   : > { %385 = vmatprep.subr.bf16.mxu0 %v336_v3  ;;  %517 = vmatmul.mubr.bf16.gmra.mxu1 %v198_v11  ;;  %v169_v3 = vld [vmem:[%s1570_s21 + $0xc0] sm:$0xff]  ;;  %v209_v11 = vpack.c.bf16 %v179_v6, %v176_v5 }
  0x3d   : > { %526 = vmatprep.mubr.bf16.mxu1 %v1324_v7 }
  0x3f   : > { %386 = vmatpush2.bf16.msra.mxu0 %v335_v10  ;;  %v205_v10 = vpack.c.bf16 %v172_v4, %v169_v3 }
  0x40   : > { %387 = vmatprep.subr.bf16.mxu0 %v334_v12  ;;  %v216_v12 = vpack.c.bf16 %v192_v9, %v189_v8 }
  0x43   : > { %388 = vmatpush2.bf16.msra.mxu0 %v333_v17  ;;  %v208_v17 = vpack.c.bf16 %v178_v14, %v175_v13 }
  0x44   : > { %389 = vmatprep.subr.bf16.mxu0 %v332_v19  ;;  %527 = vmatmul.mubr.bf16.gmra.mxu1 %v201_v26  ;;  %v184_v19 = vld [vmem:[%s1570_s21 + $0x138] sm:$0xff] }
  0x45   : > { %536 = vmatprep.mubr.bf16.mxu1 %v1324_v7  ;;  %v211_v22 = vpack.c.bf16 %v184_v19, %v181_v18 }
  0x47   : > { %390 = vmatpush2.bf16.msra.mxu0 %v331_v25  ;;  %v190_v25 = vld [vmem:[%s1570_s21 + $0x168] sm:$0xff]  ;;  %s1325_s21 = smov 64  }
  0x48   : > { %391 = vmatprep.subr.bf16.mxu0 %v330_v27  ;;  %v214_v26 = vpack.c.bf16 %v190_v25, %v187_v24 }
  0x4b   : > { %392 = vmatpush2.bf16.msra.mxu0 %v329_v30 }
  0x4c   : > { %537 = vmatmul.mubr.bf16.gmra.mxu1 %v204_v39 }
  0x4d   : > { %546 = vmatprep.mubr.bf16.mxu1 %v1324_v7 }
  0x4e   : > { %394 = vmatmul.mubr.bf16.vlgmr.msra.gmra.mxu0 %v193_v37 }
  0x4f   : > { %403 = vmatprep.mubr.bf16.mxu0 %v197_v38 }
  0x54   : > { %547 = vmatmul.mubr.bf16.gmra.mxu1 %v207_v48 }
  0x55   : > { %556 = vmatprep.mubr.bf16.mxu1 %v1324_v7 }
  0x56   : > { %404 = vmatmul.mubr.bf16.gmra.mxu0 %v196_v46 }
  0x57   : > { %413 = vmatprep.mubr.bf16.mxu0 %v200_v47 }
  0x5c   : > { %557 = vmatmul.mubr.bf16.gmra.mxu1 %v210_v57 }
  0x5d   : > { %566 = vmatprep.mubr.bf16.mxu1 %v1324_v7 }
  0x5e   : > { %414 = vmatmul.mubr.bf16.gmra.mxu0 %v199_v55 }
  0x5f   : > { %423 = vmatprep.mubr.bf16.mxu0 %v203_v56 }
  0x64   : > { %567 = vmatmul.mubr.bf16.gmra.mxu1 %v213_v2 }
  0x65   : > { %576 = vmatprep.mubr.bf16.mxu1 %v1324_v7  ;;  %v212_v7 = vpack.c.bf16 %v185_v16, %v182_v15 }
  0x66   : > { %424 = vmatmul.mubr.bf16.gmra.mxu0 %v202_v0 }
  0x67   : > { %433 = vmatprep.mubr.bf16.mxu0 %v206_v1 }
  0x6c   : > { %577 = vmatmul.mubr.bf16.gmra.mxu1 %v216_v12 }
  0x6e   : > { %434 = vmatmul.mubr.bf16.gmra.mxu0 %v205_v10 }
  0x6f   : > { %443 = vmatprep.mubr.bf16.mxu0 %v209_v11 }
  0x76   : > { %444 = vmatmul.mubr.bf16.gmra.mxu0 %v208_v17 }
  0x77   : > { %453 = vmatprep.mubr.bf16.mxu0 %v212_v7 }
  0x7e   : > { %454 = vmatmul.mubr.bf16.gmra.mxu0 %v211_v22 }
  0x7f   : > { %463 = vmatprep.mubr.bf16.mxu0 %v215_v23 }
  0x86   : > { %464 = vmatmul.mubr.bf16.gmra.mxu0 %v214_v26 }
  0xf4   : > { %v508_v27 = vpop.f32.mrf.mxu1 }
  0xf6   : > { %v510_v28 = vpop.f32.mrf.mxu1 }
  0xf8   : > { %v512_v29 = vpop.f32.mrf.mxu1 }
  0xfa   : > { %v514_v30 = vpop.f32.mrf.mxu1 }
  0xfc   : > { %v518_v31 = vpop.f32.mrf.mxu1 }
  0xfe   : > { %v520_v32 = vpop.f32.mrf.mxu1 }
 0x100   : > { %v522_v33 = vpop.f32.mrf.mxu1 }
 0x102   : > { %v524_v34 = vpop.f32.mrf.mxu1 }
 0x104   : > { %v528_v35 = vpop.f32.mrf.mxu1 }
 0x106   : > { %v1711_v36 = vpop.f32.mrf.mxu1 }
 0x108   : > { %v532_v37 = vpop.f32.mrf.mxu1 }
 0x10a   : > { %v1713_v38 = vpop.f32.mrf.mxu1 }
 0x10c   : > { %v538_v40 = vpop.f32.mrf.mxu1 }
 0x10e   : > { %v395_v39 = vpop.f32.mrf.mxu0  ;;  %v1717_v44 = vpop.f32.mrf.mxu1 }
 0x10f   : > { %v1715_v42 = vadd.f32 %v508_v27, %v395_v39 }
 0x110   : > { %v397_v41 = vpop.f32.mrf.mxu0  ;;  %v542_v47 = vpop.f32.mrf.mxu1 }
 0x111   : > { %v511_v43 = vadd.f32 %v510_v28, %v397_v41  ;;  %v587_v49 = vmul.f32 8.0, %v1715_v42 }
 0x112   : > { %v399_v45 = vpop.f32.mrf.mxu0  ;;  %v1723_v52 = vpop.f32.mrf.mxu1 }
 0x113   : > { %v1719_v46 = vadd.f32 %v512_v29, %v399_v45 }
 0x114   : > { %v401_v48 = vpop.f32.mrf.mxu0  ;;  %v548_v57 = vpop.f32.mrf.mxu1 }
 0x115   : > { %v588_v50 = vmul.f32 8.0, %v1719_v46  ;;  %v515_v51 = vadd.f32 %v514_v30, %v401_v48 }
 0x116   : > { %v405_v53 = vpop.f32.mrf.mxu0  ;;  %v1730_v60 = vpop.f32.mrf.mxu1 }
 0x117   : > { %v603_v54 = vpack.c.bf16 %v588_v50, %v587_v49  ;;  %v1725_v55 = vpack.c.bf16 %v515_v51, %v511_v43  ;;  %v1727_v56 = vadd.f32 %v518_v31, %v405_v53 }
 0x118   : > { %v407_v58 = vpop.f32.mrf.mxu0  ;;  %v552_v63 = vpop.f32.mrf.mxu1 }
 0x119   : > { %v521_v59 = vadd.f32 %v520_v32, %v407_v58  ;;  %1199 = vmatprep.mubr.msk.bf16.mxu1 %vm651_vm0, %v603_v54  ;;  %v1735_v1 = vmul.f32 8.0, %v1727_v56 }
 0x11a   : > { %v409_v61 = vpop.f32.mrf.mxu0  ;;  %v1740_v4 = vpop.f32.mrf.mxu1 }
 0x11b   : > { %v1732_v62 = vadd.f32 %v522_v33, %v409_v61 }
 0x11c   : > { %v411_v0 = vpop.f32.mrf.mxu0  ;;  %v558_v10 = vpop.f32.mrf.mxu1 }
 0x11d   : > { %v1738_v2 = vmul.f32 8.0, %v1732_v62  ;;  %v525_v3 = vadd.f32 %v524_v34, %v411_v0 }
 0x11e   : > { %v415_v5 = vpop.f32.mrf.mxu0  ;;  %v1750_v15 = vpop.f32.mrf.mxu1 }
 0x11f   : > { %v604_v6 = vpack.c.bf16 %v1738_v2, %v1735_v1  ;;  %v1744_v8 = vpack.c.bf16 %v525_v3, %v521_v59  ;;  %v529_v11 = vadd.f32 %v528_v35, %v415_v5 }
 0x120   : > { %v1746_v9 = vpop.f32.mrf.mxu0  ;;  %v562_v20 = vpop.f32.mrf.mxu1 }
 0x121   : > { %v1752_v16 = vmul.f32 8.0, %v529_v11 }
 0x122   : > { %v419_v12 = vpop.f32.mrf.mxu0  ;;  %v1766_v25 = vpop.f32.mrf.mxu1 }
 0x123   : > { %v533_v13 = vadd.f32 %v532_v37, %v419_v12 }
 0x124   : > { %v1748_v14 = vpop.f32.mrf.mxu0  ;;  %v568_v31 = vpop.f32.mrf.mxu1 }
 0x125   : > { %v1754_v17 = vmul.f32 8.0, %v533_v13 }
 0x126   : > { %v425_v7 = vpop.f32.mrf.mxu0  ;;  %v570_v37 = vpop.f32.mrf.mxu1 }
 0x127   : > { %v605_v18 = vpack.c.bf16 %v1754_v17, %v1752_v16  ;;  %v1760_v21 = vadd.f32 %v538_v40, %v425_v7 }
 0x128   : > { %v1758_v19 = vpop.f32.mrf.mxu0 }
 0x129   : > { %v1769_v26 = vmul.f32 8.0, %v1760_v21 }
 0x12a   : > { %v429_v22 = vpop.f32.mrf.mxu0 }
 0x12b   : > { %v1762_v23 = vadd.f32 %v542_v47, %v429_v22  ;;  %v572_v47 = vpop.f32.mrf.mxu1  ;;  %v613_v22 = vpack.c.bf16 %v533_v13, %v529_v11 }
 0x12c   : > { %v1764_v24 = vpop.f32.mrf.mxu0 }
 0x12d   : > { %v1772_v27 = vmul.f32 8.0, %v1762_v23  ;;  %v574_v53 = vpop.f32.mrf.mxu1 }
 0x12e   : > { %v435_v28 = vpop.f32.mrf.mxu0 }
 0x12f   : > { %v606_v29 = vpack.c.bf16 %v1772_v27, %v1769_v26  ;;  %v549_v32 = vadd.f32 %v548_v57, %v435_v28  ;;  %v578_v0 = vpop.f32.mrf.mxu1  ;;  %v797_v26 = vlaneseq }
 0x130   : > { %v1776_v30 = vpop.f32.mrf.mxu0 }
 0x131   : > { %v1780_v39 = vmul.f32 8.0, %v549_v32  ;;  %v580_v7 = vpop.f32.mrf.mxu1 }
 0x132   : > { %v439_v33 = vpop.f32.mrf.mxu0 }
 0x133   : > { %v553_v34 = vadd.f32 %v552_v63, %v439_v33 }
 0x134   : > { %v1778_v35 = vpop.f32.mrf.mxu0 }
 0x135   : > { %v1782_v40 = vmul.f32 8.0, %v553_v34  ;;  %v615_v3 = vpack.c.bf16 %v553_v34, %v549_v32  ;;  %v611_v34 = vpack.c.bf16 %v1719_v46, %v1715_v42 }
 0x136   : > { %v445_v41 = vpop.f32.mrf.mxu0 }
 0x137   : > { %v607_v43 = vpack.c.bf16 %v1782_v40, %v1780_v39  ;;  %v559_v48 = vadd.f32 %v558_v10, %v445_v41  ;;  %v798_v39 = vshrl.u32 %v797_v26, 7 }
 0x138   : > { %v447_v45 = vpop.f32.mrf.mxu0 }
 0x139   : > { %v1786_v54 = vmul.f32 8.0, %v559_v48 }
 0x13a   : > { %v449_v49 = vpop.f32.mrf.mxu0 }
 0x13b   : > { %v563_v50 = vadd.f32 %v562_v20, %v449_v49  ;;  %v582_v49 = vpop.f32.mrf.mxu1 }
 0x13c   : > { %v451_v51 = vpop.f32.mrf.mxu0 }
 0x13d   : > { %v1788_v57 = vmul.f32 8.0, %v563_v50  ;;  %v616_v58 = vpack.c.bf16 %v563_v50, %v559_v48  ;;  %v565_v42 = vadd.f32 %v1766_v25, %v451_v51  ;;  %v551_v51 = vadd.f32 %v1730_v60, %v1776_v30 }
 0x13e   : > { %v455_v59 = vpop.f32.mrf.mxu0  ;;  %v535_v60 = vadd.f32 %v1713_v38, %v1748_v14 }
 0x13f   : > { %645 = vrot.lane.b32.xlu1 %v616_v58, %s1325_s21  ;;  %v569_v5 = vadd.f32 %v568_v31, %v455_v59  ;;  %v584_v58 = vpop.f32.mrf.mxu1  ;;  %v2009_v1 = vpack.c.bf16 %v1788_v57, %v1786_v54  ;;  %v800_v54 = vadd.s32 16, %v798_v39  ;;  %v1902_v57 = vand.u32 127, %v797_v26 }
 0x140   : > { %v457_v63 = vpop.f32.mrf.mxu0 }
 0x141   : > { %v1794_v28 = vmul.f32 8.0, %v569_v5  ;;  %v571_v61 = vadd.f32 %v570_v37, %v457_v63  ;;  %v614_v37 = vpack.c.bf16 %v1762_v23, %v1760_v21  ;;  %v555_v63 = vadd.f32 %v1740_v4, %v1778_v35 }
 0x142   : > { %v459_v10 = vpop.f32.mrf.mxu0  ;;  %v545_v21 = vadd.f32 %v1723_v52, %v1764_v24  ;;  %v541_v4 = vadd.f32 %v1717_v44, %v1758_v19  ;;  %vm818_vm1 = vcmp.gt.s32.totalorder %v1902_v57, %v800_v54  ;;  %vm816_vm3 = vcmp.gt.s32.totalorder %v1902_v57, %v798_v39 }
 0x143   : > { %v573_v12 = vadd.f32 %v572_v47, %v459_v10  ;;  %643 = vrot.lane.b32.xlu1 %v615_v3, %s1325_s21  ;;  %v623_v23 = vpack.c.bf16 %v555_v63, %v551_v51 }
 0x144   : > { %v461_v20 = vpop.f32.mrf.mxu0  ;;  %v622_v30 = vpack.c.bf16 %v545_v21, %v541_v4 }
 0x145   : > { %v1796_v33 = vmul.f32 8.0, %v573_v12  ;;  %v575_v11 = vadd.f32 %v574_v53, %v461_v20  ;;  %v617_v46 = vpack.c.bf16 %v573_v12, %v569_v5 }
 0x146   : > { %v465_v41 = vpop.f32.mrf.mxu0 }
 0x147   : > { %639 = vrot.lane.b32.xlu1 %v613_v22, %s1325_s21  ;;  %v579_v32 = vadd.f32 %v578_v0, %v465_v41  ;;  %v1814_v53 = vpack.c.bf16 %v575_v11, %v571_v61  ;;  %v2010_v2 = vpack.c.bf16 %v1796_v33, %v1794_v28  ;;  %v805_v28 = vadd.s32 56, %v798_v39 }
 0x148   : > { %v467_v31 = vpop.f32.mrf.mxu0  ;;  %v808_v11 = vadd.s32 80, %v798_v39 }
 0x149   : > { %v1804_v13 = vmul.f32 8.0, %v579_v32  ;;  %v581_v3 = vadd.f32 %v580_v7, %v467_v31  ;;  %v561_v7 = vadd.f32 %v1750_v15, %v447_v45  ;;  %v612_v15 = vpack.c.bf16 %v1732_v62, %v1727_v56 }
 0x14a   : > { %v469_v47 = vpop.f32.mrf.mxu0  ;;  %v531_v56 = vadd.f32 %v1711_v36, %v1746_v9  ;;  %v804_v31 = vadd.s32 48, %v798_v39  ;;  %vm823_vm2 = vcmp.gt.s32.totalorder %v1902_v57, %v805_v28  ;;  %vm826_vm10 = vcmp.gt.s32.totalorder %v1902_v57, %v808_v11 }
 0x14b   : > { %v583_v50 = vadd.f32 %v582_v49, %v469_v47  ;;  %635 = vrot.lane.b32.xlu1 %v611_v34, %s1325_s21  ;;  %v1825_v25 = vpack.c.bf16 %v565_v42, %v561_v7  ;;  %v802_v34 = vadd.s32 32, %v798_v39 }
 0x14c   : > { %v471_v59 = vpop.f32.mrf.mxu0  ;;  %v621_v62 = vpack.c.bf16 %v535_v60, %v531_v56  ;;  %vm822_vm6 = vcmp.gt.s32.totalorder %v1902_v57, %v804_v31 }
 0x14d   : > { %v1806_v10 = vmul.f32 8.0, %v583_v50  ;;  %v585_v48 = vadd.f32 %v584_v58, %v471_v59  ;;  %v618_v22 = vpack.c.bf16 %v583_v50, %v579_v32  ;;  %v799_v32 = vadd.s32 8, %v798_v39 }
 0x14e   : > { %v809_v50 = vadd.s32 88, %v798_v39  ;;  %v807_v58 = vadd.s32 72, %v798_v39  ;;  %vm820_vm7 = vcmp.gt.s32.totalorder %v1902_v57, %v802_v34 }
 0x14f   : > { %v610_v0 = vpack.c.bf16 %v1806_v10, %v1804_v13  ;;  %v1810_v41 = vpack.c.bf16 %v585_v48, %v581_v3  ;;  %649 = vrot.lane.b32.xlu0 %v618_v22, %s1325_s21  ;;  %v806_v13 = vadd.s32 64, %v798_v39  ;;  %v812_v3 = vadd.s32 112, %v798_v39 }
 0x150   : > { %v810_v10 = vadd.s32 96, %v798_v39  ;;  %v813_v22 = vadd.s32 120, %v798_v39  ;;  %vm817_vm5 = vcmp.gt.s32.totalorder %v1902_v57, %v799_v32  ;;  %vm827_vm9 = vcmp.gt.s32.totalorder %v1902_v57, %v809_v50 }
 0x151   : > { %1215 = vmatprep.subr.bf16.mxu0 %v1810_v41  ;;  %vm824_vm11 = vcmp.gt.s32.totalorder %v1902_v57, %v806_v13  ;;  %vm825_vm12 = vcmp.gt.s32.totalorder %v1902_v57, %v807_v58  ;;  %vm830_vm13 = vcmp.gt.s32.totalorder %v1902_v57, %v812_v3 }
 0x152   : > { %1216 = vmatpush3.bf16.msra.mxu0 %v1810_v41  ;;  %vm828_vm14 = vcmp.gt.s32.totalorder %v1902_v57, %v810_v10  ;;  %vm831_vm15 = vcmp.gt.s32.totalorder %v1902_v57, %v813_v22 }
 0x153   : > { %647 = vrot.lane.b32.xlu0 %v617_v46, %s1325_s21  ;;  %1217 = vmatprep.subr.bf16.mxu0 %v1814_v53 }
 0x156   : > { %1218 = vmatpush3.bf16.msra.mxu0 %v1814_v53 }
 0x157   : > { %641 = vrot.lane.b32.xlu0 %v614_v37, %s1325_s21  ;;  %1219 = vmatprep.subr.bf16.mxu0 %v1825_v25 }
 0x15a   : > { %1220 = vmatpush3.bf16.msra.mxu0 %v1825_v25 }
 0x15b   : > { %637 = vrot.lane.b32.xlu0 %v612_v15, %s1325_s21  ;;  %1221 = vmatprep.subr.bf16.mxu0 %v623_v23 }
 0x15e   : > { %1222 = vmatpush3.bf16.msra.mxu0 %v623_v23 }
 0x15f   : > { %1223 = vmatprep.subr.bf16.mxu0 %v622_v30 }
 0x162   : > { %1224 = vmatpush3.bf16.msra.mxu0 %v622_v30 }
 0x163   : > { %1225 = vmatprep.subr.bf16.mxu0 %v621_v62 }
 0x166   : > { %1226 = vmatpush3.bf16.msra.mxu0 %v621_v62 }
 0x167   : > { %1227 = vmatprep.subr.bf16.mxu0 %v1744_v8 }
 0x16a   : > { %1228 = vmatpush3.bf16.msra.mxu0 %v1744_v8 }
 0x16b   : > { %1229 = vmatprep.subr.bf16.mxu0 %v1725_v55 }
 0x16e   : > { %1230 = vmatpush3.bf16.msra.mxu0 %v1725_v55 }
 0x1b1   : > { %v646_v9 = vpop.permute.xlu1 %645 }
 0x1b2   : > { %v692_v14 = vsel %vm651_vm0, %v646_v9, 0 }
 0x1b5   : > { %v644_v19 = vpop.permute.xlu1 %643 }
 0x1b6   : > { %v689_v24 = vsel %vm651_vm0, %v644_v19, 0 }
 0x1b9   : > { %v640_v61 = vpop.permute.xlu1 %639 }
 0x1ba   : > { %v683_v5 = vsel %vm651_vm0, %v640_v61, 0 }
 0x1bd   : > { %v636_v48 = vpop.permute.xlu1 %635 }
 0x1be   : > { %v677_v49 = vsel %vm651_vm0, %v636_v48, 0 }
 0x1c1   : > { %v650_v44 = vpop.permute.xlu0 %649 }
 0x1c2   : > { %v698_v38 = vsel %vm651_vm0, %v650_v44, 0  ;;  %1263 = vmatprep.subr.msk.bf16.mxu1 %vm651_vm0, %v650_v44 }
 0x1c3   : > { %1184 = vmatpush3.bf16.xpose.msra.mxu1 %v698_v38 }
 0x1c5   : > { %v648_v36 = vpop.permute.xlu0 %647 }
 0x1c6   : > { %1264 = vmatprep.subr.msk.bf16.mxu1 %vm651_vm0, %v648_v36  ;;  %v695_v52 = vsel %vm651_vm0, %v648_v36, 0 }
 0x1c9   : > { %v642_v35 = vpop.permute.xlu0 %641 }
 0x1ca   : > { %v686_v45 = vsel %vm651_vm0, %v642_v35, 0 }
 0x1cb   : > { %1186 = vmatpush3.bf16.xpose.msra.mxu1 %v695_v52 }
 0x1cc   : > { %1265 = vmatprep.subr.msk.bf16.mxu1 %vm651_vm0, %v646_v9 }
 0x1cd   : > { %v638_v12 = vpop.permute.xlu0 %637 }
 0x1ce   : > { %v680_v20 = vsel %vm651_vm0, %v638_v12, 0 }
 0x1d3   : > { %1188 = vmatpush3.bf16.xpose.msra.mxu1 %v692_v14 }
 0x1d4   : > { %1266 = vmatprep.subr.msk.bf16.mxu1 %vm651_vm0, %v644_v19 }
 0x1db   : > { %1190 = vmatpush3.bf16.xpose.msra.mxu1 %v689_v24 }
 0x1dc   : > { %1267 = vmatprep.subr.msk.bf16.mxu1 %vm651_vm0, %v642_v35 }
 0x1e3   : > { %1192 = vmatpush3.bf16.xpose.msra.mxu1 %v686_v45 }
 0x1e4   : > { %1268 = vmatprep.subr.msk.bf16.mxu1 %vm651_vm0, %v640_v61 }
 0x1eb   : > { %1194 = vmatpush3.bf16.xpose.msra.mxu1 %v683_v5 }
 0x1ec   : > { %1269 = vmatprep.subr.msk.bf16.mxu1 %vm651_vm0, %v638_v12 }
 0x1f3   : > { %1196 = vmatpush3.bf16.xpose.msra.mxu1 %v680_v20 }
 0x1f4   : > { %1270 = vmatprep.subr.msk.bf16.mxu1 %vm651_vm0, %v636_v48 }
 0x1fb   : > { %1198 = vmatpush3.bf16.xpose.msra.mxu1 %v677_v49 }
 0x1fc   : > { %1247 = vmatprep.subr.bf16.mxu1 %v1810_v41 }
 0x202   : > { %1200 = vmatmul.mubr.msk.bf16.vlgmr.msra.gmra.mxu1 %vm651_vm0, %v604_v6 }
 0x203   : > { %1203 = vmatprep.mubr.msk.bf16.mxu1 %vm651_vm0, %v605_v18  ;;  %1255 = vmatpush3.bf16.msra.mxu1 %v1810_v41  ;;  %v811_v41 = vadd.s32 104, %v798_v39 }
 0x204   : > { %1248 = vmatprep.subr.bf16.mxu1 %v1814_v53 }
 0x207   : > { %1256 = vmatpush3.bf16.msra.mxu1 %v1814_v53 }
 0x208   : > { %1249 = vmatprep.subr.bf16.mxu1 %v1825_v25 }
 0x20a   : > { %1204 = vmatmul.mubr.msk.bf16.gmra.mxu1 %vm651_vm0, %v606_v29 }
 0x20b   : > { %1207 = vmatprep.mubr.msk.bf16.mxu1 %vm651_vm0, %v607_v43  ;;  %1257 = vmatpush3.bf16.msra.mxu1 %v1825_v25 }
 0x20c   : > { %1250 = vmatprep.subr.bf16.mxu1 %v623_v23 }
 0x20f   : > { %1258 = vmatpush3.bf16.msra.mxu1 %v623_v23 }
 0x210   : > { %1251 = vmatprep.subr.bf16.mxu1 %v622_v30 }
 0x212   : > { %1208 = vmatmul.mubr.msk.bf16.gmra.mxu1 %vm651_vm0, %v2009_v1 }
 0x213   : > { %1211 = vmatprep.mubr.msk.bf16.mxu1 %vm651_vm0, %v2010_v2  ;;  %1259 = vmatpush3.bf16.msra.mxu1 %v622_v30 }
 0x214   : > { %1252 = vmatprep.subr.bf16.mxu1 %v621_v62 }
 0x217   : > { %1260 = vmatpush3.bf16.msra.mxu1 %v621_v62 }
 0x218   : > { %1253 = vmatprep.subr.bf16.mxu1 %v1744_v8 }
 0x21a   : > { %1212 = vmatmul.mubr.msk.bf16.gmra.mxu1 %vm651_vm0, %v610_v0 }
 0x21b   : > { %1261 = vmatpush3.bf16.msra.mxu1 %v1744_v8  ;;  %v801_v8 = vadd.s32 24, %v798_v39 }
 0x21c   : > { %1254 = vmatprep.subr.bf16.mxu1 %v1725_v55 }
 0x21d   : > { %vm819_vm4 = vcmp.gt.s32.totalorder %v1902_v57, %v801_v8 }
 0x21f   : > { %1262 = vmatpush3.bf16.msra.mxu1 %v1725_v55  ;;  %v803_v55 = vadd.s32 40, %v798_v39 }
 0x221   : > { %vm821_vm8 = vcmp.gt.s32.totalorder %v1902_v57, %v803_v55 }
 0x2c2   : > { %v1201_v6 = vpop.f32.mrf.mxu1 }
 0x2c3   : > { %v834_v51 = vsel %vm818_vm1, -inf, %v1201_v6 }
 0x2c4   : > { %v734_v16 = vpop.f32.mrf.mxu1 }
 0x2c5   : > { %v832_v15 = vsel %vm816_vm3, -inf, %v734_v16 }
 0x2c6   : > { %v1202_v17 = vpop.f32.mrf.mxu1 }
 0x2c7   : > { %v835_v46 = vsel %vm819_vm4, -inf, %v1202_v17 }
 0x2c8   : > { %v737_v18 = vpop.f32.mrf.mxu1 }
 0x2c9   : > { %v833_v4 = vsel %vm817_vm5, -inf, %v737_v18 }
 0x2ca   : > { %v1205_v27 = vpop.f32.mrf.mxu1 }
 0x2cb   : > { %v838_v7 = vsel %vm822_vm6, -inf, %v1205_v27 }
 0x2cc   : > { %v750_v29 = vpop.f32.mrf.mxu1  ;;  %v850_v62 = vmax.f32 %v834_v51, %v838_v7 }
 0x2cd   : > { %v836_v37 = vsel %vm820_vm7, -inf, %v750_v29 }
 0x2ce   : > { %v1206_v40 = vpop.f32.mrf.mxu1  ;;  %v848_v44 = vmax.f32 %v832_v15, %v836_v37 }
 0x2cf   : > { %v1913_v42 = vsel %vm823_vm2, -inf, %v1206_v40  ;;  %vm829_vm2 = vcmp.gt.s32.totalorder %v1902_v57, %v811_v41 }
 0x2d0   : > { %v753_v43 = vpop.f32.mrf.mxu1  ;;  %v851_v21 = vmax.f32 %v835_v46, %v1913_v42 }
 0x2d1   : > { %v837_v63 = vsel %vm821_vm8, -inf, %v753_v43 }
 0x2d2   : > { %v1209_v33 = vpop.f32.mrf.mxu1  ;;  %v849_v38 = vmax.f32 %v833_v4, %v837_v63 }
 0x2d3   : > { %v1933_v60 = vsel %vm826_vm10, -inf, %v1209_v33 }
 0x2d4   : > { %v766_v47 = vpop.f32.mrf.mxu1  ;;  %v854_v24 = vmax.f32 %v850_v62, %v1933_v60 }
 0x2d5   : > { %v840_v30 = vsel %vm824_vm11, -inf, %v766_v47 }
 0x2d6   : > { %v1210_v59 = vpop.f32.mrf.mxu1  ;;  %v852_v35 = vmax.f32 %v848_v44, %v840_v30 }
 0x2d7   : > { %v1921_v25 = vsel %vm827_vm9, -inf, %v1210_v59 }
 0x2d8   : > { %v769_v0 = vpop.f32.mrf.mxu1  ;;  %v855_v36 = vmax.f32 %v851_v21, %v1921_v25 }
 0x2d9   : > { %v841_v56 = vsel %vm825_vm12, -inf, %v769_v0 }
 0x2da   : > { %v1213_v53 = vpop.f32.mrf.mxu1  ;;  %v853_v45 = vmax.f32 %v849_v38, %v841_v56 }
 0x2db   : > { %v1942_v9 = vsel %vm830_vm13, -inf, %v1213_v53 }
 0x2dc   : > { %v782_v23 = vpop.f32.mrf.mxu1  ;;  %v858_v20 = vmax.f32 %v854_v24, %v1942_v9 }
 0x2dd   : > { %v1946_v14 = vsel %vm828_vm14, -inf, %v782_v23 }
 0x2de   : > { %v1214_v52 = vpop.f32.mrf.mxu1  ;;  %v856_v48 = vmax.f32 %v852_v35, %v1946_v14 }
 0x2df   : > { %v1950_v19 = vsel %vm831_vm15, -inf, %v1214_v52 }
 0x2e0   : > { %v859_v61 = vmax.f32 %v855_v36, %v1950_v19  ;;  %v785_v5 = vpop.f32.mrf.mxu1 }
 0x2e1   : > { %v845_v12 = vsel %vm829_vm2, -inf, %v785_v5 }
 0x2e2   : > { %v857_v49 = vmax.f32 %v853_v45, %v845_v12  ;;  %v861_v1 = vmax.f32 %v858_v20, %v859_v61 }
 0x2e4   : > { %v860_v2 = vmax.f32 %v856_v48, %v857_v49 }
 0x2e6   : > { %v862_v6 = vmax.f32 %v860_v2, %v861_v1 }
 0x2e8   : > { %v863_v16 = vrot.slane %v862_v6, 4 }
 0x2ea   : > { %v864_v17 = vmax.f32 %v862_v6, %v863_v16 }
 0x2ec   : > { %v865_v18 = vrot.slane %v864_v17, 2 }
 0x2ee   : > { %v866_v26 = vmax.f32 %v864_v17, %v865_v18 }
 0x2f0   : > { %v867_v27 = vrot.slane %v866_v26, 1 }
 0x2f2   : > { %v868_v29 = vmax.f32 %v866_v26, %v867_v27 }
 0x2f4   : > { %v869_v39 = vsub.f32 %v832_v15, %v868_v29  ;;  %v870_v40 = vsub.f32 %v833_v4, %v868_v29  ;;  %v871_v43 = vsub.f32 %v834_v51, %v868_v29  ;;  %v872_v54 = vsub.f32 %v835_v46, %v868_v29 }
 0x2f5   : > { %v873_v33 = vsub.f32 %v836_v37, %v868_v29  ;;  %v874_v32 = vsub.f32 %v837_v63, %v868_v29  ;;  %v875_v34 = vsub.f32 %v838_v7, %v868_v29  ;;  %v876_v47 = vsub.f32 %v1913_v42, %v868_v29 }
 0x2f6   : > { %v885_v57 = vmul.f32 1.442695, %v869_v39  ;;  %v887_v28 = vmul.f32 1.442695, %v870_v40  ;;  %v889_v8 = vmul.f32 1.442695, %v871_v43  ;;  %v877_v11 = vsub.f32 %v840_v30, %v868_v29 }
 0x2f7   : > { %v891_v31 = vmul.f32 1.442695, %v872_v54  ;;  %v893_v55 = vmul.f32 1.442695, %v873_v33  ;;  %v895_v50 = vmul.f32 1.442695, %v874_v32  ;;  %v878_v58 = vsub.f32 %v841_v56, %v868_v29 }
 0x2f8   : > { %1282 = vpow2.f32 %v885_v57  ;;  %v897_v13 = vmul.f32 1.442695, %v875_v34  ;;  %v899_v59 = vmul.f32 1.442695, %v876_v47  ;;  %v879_v3 = vsub.f32 %v1933_v60, %v868_v29 }
 0x2f9   : > { %1284 = vpow2.f32 %v887_v28  ;;  %v901_v10 = vmul.f32 1.442695, %v877_v11  ;;  %v880_v0 = vsub.f32 %v1921_v25, %v868_v29  ;;  %v903_v41 = vmul.f32 1.442695, %v878_v58 }
 0x2fa   : > { %1286 = vpow2.f32 %v889_v8  ;;  %v881_v42 = vsub.f32 %v1946_v14, %v868_v29  ;;  %v905_v53 = vmul.f32 1.442695, %v879_v3  ;;  %v882_v63 = vsub.f32 %v845_v12, %v868_v29 }
 0x2fb   : > { %1288 = vpow2.f32 %v891_v31  ;;  %v907_v51 = vmul.f32 1.442695, %v880_v0  ;;  %v883_v23 = vsub.f32 %v1942_v9, %v868_v29  ;;  %v884_v30 = vsub.f32 %v1950_v19, %v868_v29 }
 0x2fc   : > { %1290 = vpow2.f32 %v893_v55  ;;  %v909_v4 = vmul.f32 1.442695, %v881_v42  ;;  %v911_v56 = vmul.f32 1.442695, %v882_v63 }
 0x2fd   : > { %1292 = vpow2.f32 %v895_v50  ;;  %v913_v38 = vmul.f32 1.442695, %v883_v23  ;;  %v915_v14 = vmul.f32 1.442695, %v884_v30 }
 0x2fe   : > { %1294 = vpow2.f32 %v897_v13 }
 0x2ff   : > { %1296 = vpow2.f32 %v899_v59 }
 0x300   : > { %1298 = vpow2.f32 %v901_v10 }
 0x301   : > { %1300 = vpow2.f32 %v903_v41 }
 0x302   : > { %1302 = vpow2.f32 %v905_v53 }
 0x303   : > { %1304 = vpow2.f32 %v907_v51 }
 0x304   : > { %1306 = vpow2.f32 %v909_v4 }
 0x305   : > { %v1283_v22 = vpop.eup %1282  ;;  %1308 = vpow2.f32 %v911_v56 }
 0x306   : > { %v1285_v46 = vpop.eup %1284  ;;  %1310 = vpow2.f32 %v913_v38 }
 0x307   : > { %v917_v7 = vadd.f32 %v1285_v46, %v1283_v22  ;;  %v1287_v37 = vpop.eup %1286  ;;  %1312 = vpow2.f32 %v915_v14 }
 0x308   : > { %v1289_v21 = vpop.eup %1288 }
 0x309   : > { %v918_v15 = vadd.f32 %v1287_v37, %v917_v7  ;;  %v1291_v25 = vpop.eup %1290 }
 0x30a   : > { %v1293_v44 = vpop.eup %1292 }
 0x30b   : > { %v919_v60 = vadd.f32 %v1289_v21, %v918_v15  ;;  %v1295_v52 = vpop.eup %1294 }
 0x30c   : > { %v1297_v35 = vpop.eup %1296 }
 0x30d   : > { %v920_v62 = vadd.f32 %v1291_v25, %v919_v60  ;;  %v1299_v45 = vpop.eup %1298 }
 0x30e   : > { %v1301_v5 = vpop.eup %1300 }
 0x30f   : > { %v921_v36 = vadd.f32 %v1293_v44, %v920_v62  ;;  %v1303_v19 = vpop.eup %1302 }
 0x310   : > { %v1305_v48 = vpop.eup %1304 }
 0x311   : > { %v922_v24 = vadd.f32 %v1295_v52, %v921_v36  ;;  %v1307_v1 = vpop.eup %1306 }
 0x312   : > { %v1309_v6 = vpop.eup %1308 }
 0x313   : > { %v923_v9 = vadd.f32 %v1297_v35, %v922_v24  ;;  %v1311_v17 = vpop.eup %1310 }
 0x314   : > { %v1313_v26 = vpop.eup %1312 }
 0x315   : > { %v924_v61 = vadd.f32 %v1299_v45, %v923_v9 }
 0x317   : > { %v925_v12 = vadd.f32 %v1301_v5, %v924_v61 }
 0x319   : > { %v926_v20 = vadd.f32 %v1303_v19, %v925_v12 }
 0x31b   : > { %v927_v49 = vadd.f32 %v1305_v48, %v926_v20 }
 0x31d   : > { %v928_v2 = vadd.f32 %v1307_v1, %v927_v49 }
 0x31f   : > { %v929_v16 = vadd.f32 %v1309_v6, %v928_v2 }
 0x321   : > { %v930_v18 = vadd.f32 %v1311_v17, %v929_v16 }
 0x323   : > { %v931_v27 = vadd.f32 %v1313_v26, %v930_v18 }
 0x325   : > { %v932_v29 = vrot.slane %v931_v27, 4 }
 0x327   : > { %v933_v39 = vadd.f32 %v932_v29, %v931_v27 }
 0x329   : > { %v934_v40 = vrot.slane %v933_v39, 2 }
 0x32b   : > { %v935_v43 = vadd.f32 %v934_v40, %v933_v39 }
 0x32d   : > { %v936_v54 = vrot.slane %v935_v43, 1 }
 0x32f   : > { %v937_v57 = vadd.f32 %v936_v54, %v935_v43 }
 0x331   : > { %1314 = vrcp.f32 %v937_v57 }
 0x33e   : > { %v1315_v28 = vpop.eup %1314 }
 0x33f   : > { %v940_v33 = vmul.f32 %v1315_v28, %v1283_v22  ;;  %v941_v8 = vmul.f32 %v1315_v28, %v1285_v46  ;;  %v948_v32 = vmul.f32 %v1315_v28, %v1299_v45  ;;  %v949_v31 = vmul.f32 %v1315_v28, %v1301_v5 }
 0x340   : > { %v942_v34 = vmul.f32 %v1315_v28, %v1287_v37  ;;  %v943_v55 = vmul.f32 %v1315_v28, %v1289_v21  ;;  %v950_v47 = vmul.f32 %v1315_v28, %v1303_v19  ;;  %v951_v50 = vmul.f32 %v1315_v28, %v1305_v48 }
 0x341   : > { %v956_v11 = vpack.c.bf16 %v941_v8, %v940_v33  ;;  %v960_v13 = vpack.c.bf16 %v949_v31, %v948_v32  ;;  %v944_v58 = vmul.f32 %v1315_v28, %v1291_v25  ;;  %v945_v59 = vmul.f32 %v1315_v28, %v1293_v44 }
 0x342   : > { %v957_v3 = vpack.c.bf16 %v943_v55, %v942_v34  ;;  %v961_v10 = vpack.c.bf16 %v951_v50, %v950_v47  ;;  %v952_v0 = vmul.f32 %v1315_v28, %v1307_v1  ;;  %v953_v41 = vmul.f32 %v1315_v28, %v1309_v6 }
 0x343   : > { %1231 = vmatprep.mubr.bf16.mxu0 %v956_v11  ;;  %1239 = vmatprep.mubr.bf16.mxu1 %v960_v13  ;;  %v958_v42 = vpack.c.bf16 %v945_v59, %v944_v58  ;;  %v946_v22 = vmul.f32 %v1315_v28, %v1295_v52  ;;  %v947_v46 = vmul.f32 %v1315_v28, %v1297_v35 }
 0x344   : > { %1232 = vmatmul.mubr.bf16.vlgmr.msra.gmra.mxu0 %v957_v3  ;;  %1240 = vmatmul.mubr.bf16.vlgmr.msra.gmra.mxu1 %v961_v10  ;;  %v962_v53 = vpack.c.bf16 %v953_v41, %v952_v0  ;;  %v954_v37 = vmul.f32 %v1315_v28, %v1311_v17  ;;  %v955_v63 = vmul.f32 %v1315_v28, %v1313_v26 }
 0x345   : > { %1235 = vmatprep.mubr.bf16.mxu0 %v958_v42  ;;  %v959_v7 = vpack.c.bf16 %v947_v46, %v946_v22 }
 0x346   : > { %1243 = vmatprep.mubr.bf16.mxu1 %v962_v53  ;;  %v963_v51 = vpack.c.bf16 %v955_v63, %v954_v37 }
 0x34c   : > { %1236 = vmatmul.mubr.bf16.gmra.mxu0 %v959_v7  ;;  %1244 = vmatmul.mubr.bf16.gmra.mxu1 %v963_v51 }
 0x404   : > { %v1233_v15 = vpop.f32.mrf.mxu0  ;;  %v1241_v21 = vpop.f32.mrf.mxu1 }
 0x405   : > { %1063 = vst.msk [vmem:[%s1968_s3 + $0x10] sm:$0xff] %vm651_vm0, %v1233_v15  ;;  %1071 = vst.msk [vmem:[%s1968_s3 + $0x50] sm:$0xff] %vm651_vm0, %v1241_v21 }
 0x406   : > { %v998_v23 = vpop.f32.mrf.mxu0  ;;  %v1030_v4 = vpop.f32.mrf.mxu1 }
 0x407   : > { %1061 = vst.msk [vmem:[%s1968_s3] sm:$0xff] %vm651_vm0, %v998_v23  ;;  %1069 = vst.msk [vmem:[%s1968_s3 + $0x40] sm:$0xff] %vm651_vm0, %v1030_v4 }
 0x408   : > { %v1234_v60 = vpop.f32.mrf.mxu0  ;;  %v1242_v25 = vpop.f32.mrf.mxu1 }
 0x409   : > { %1064 = vst.msk [vmem:[%s1968_s3 + $0x18] sm:$0xff] %vm651_vm0, %v1234_v60  ;;  %1072 = vst.msk [vmem:[%s1968_s3 + $0x58] sm:$0xff] %vm651_vm0, %v1242_v25 }
 0x40a   : > { %v1001_v30 = vpop.f32.mrf.mxu0  ;;  %v1033_v56 = vpop.f32.mrf.mxu1 }
 0x40b   : > { %1062 = vst.msk [vmem:[%s1968_s3 + $0x8] sm:$0xff] %vm651_vm0, %v1001_v30  ;;  %1070 = vst.msk [vmem:[%s1968_s3 + $0x48] sm:$0xff] %vm651_vm0, %v1033_v56 }
 0x40c   : > { %v1237_v62 = vpop.f32.mrf.mxu0  ;;  %v1245_v44 = vpop.f32.mrf.mxu1 }
 0x40d   : > { %1067 = vst.msk [vmem:[%s1968_s3 + $0x30] sm:$0xff] %vm651_vm0, %v1237_v62  ;;  %1075 = vst.msk [vmem:[%s1968_s3 + $0x70] sm:$0xff] %vm651_vm0, %v1245_v44 }
 0x40e   : > { %v1014_v38 = vpop.f32.mrf.mxu0  ;;  %v1046_v36 = vpop.f32.mrf.mxu1 }
 0x40f   : > { %1065 = vst.msk [vmem:[%s1968_s3 + $0x20] sm:$0xff] %vm651_vm0, %v1014_v38  ;;  %1073 = vst.msk [vmem:[%s1968_s3 + $0x60] sm:$0xff] %vm651_vm0, %v1046_v36 }
 0x410   : > { %v1238_v52 = vpop.f32.mrf.mxu0  ;;  %v1246_v14 = vpop.f32.mrf.mxu1 }
 0x411   : > { %1068 = vst.msk [vmem:[%s1968_s3 + $0x38] sm:$0xff] %vm651_vm0, %v1238_v52  ;;  %1076 = vst.msk [vmem:[%s1968_s3 + $0x78] sm:$0xff] %vm651_vm0, %v1246_v14 }
 0x412   : > { %v1017_v24 = vpop.f32.mrf.mxu0  ;;  %v1049_v35 = vpop.f32.mrf.mxu1 }
 0x413   : > { %1066 = vst.msk [vmem:[%s1968_s3 + $0x28] sm:$0xff] %vm651_vm0, %v1017_v24  ;;  %1074 = vst.msk [vmem:[%s1968_s3 + $0x68] sm:$0xff] %vm651_vm0, %v1049_v35 }
 0x414 PF: > { %s12_s9 = sadd.s32 1, %s1322_s9  }
 0x415   : > { %p9_p4 = scmp.ge.s32.totalorder %s12_s9, 4  }
 0x417   :  { %11 = sbr.rel (!%p9_p4) target bundleno = 1 (0x1), region = 58 }

</bundles_post_ra>
